<compile_context>
chip_gen: v6e
topology: v6e:2x2x1
jax: 0.10.0
libtpu: 0.0.40
codegen_flags: <defaults>
</compile_context>

<pallas_src>
import functools

import jax
import jax.numpy as jnp
from jax import lax
from jax.experimental import pallas as pl
from jax.experimental.pallas import tpu as pltpu


# ----------------------------------------------------------------------------
# Kernels
# ----------------------------------------------------------------------------

def _gap_full_kernel(x_ref, o_ref, *, inv_hw):
    """Whole H*W row fits in one block: single reduction step per row block."""
    o_ref[...] = (jnp.sum(x_ref[...], axis=-1, keepdims=True,
                          dtype=jnp.float32) * inv_hw).astype(o_ref.dtype)


def _accum_lane_chunks(x_ref, acc_ref, n_valid):
    """acc[r, l] += sum_c x[r, 128*c + l] over the first n_valid columns.

    Pure lane-aligned VPU adds (no cross-lane reduce, no 1-lane accumulator
    read-modify-write). `n_valid` is a static Python int, so the partial lane
    chunk (if any) is masked statically and out-of-range chunks are never read.
    """
    row_tile = acc_ref.shape[0]
    n_full = n_valid // 128
    part = jnp.zeros((row_tile, 128), jnp.float32)
    if n_full > 0:
        def body(c, p):
            start = pl.multiple_of(c * 128, 128)
            return p + x_ref[:, pl.ds(start, 128)].astype(jnp.float32)
        part = lax.fori_loop(0, n_full, body, part, unroll=8)
    rem_lanes = n_valid - n_full * 128
    if rem_lanes:
        v = x_ref[:, n_full * 128:(n_full + 1) * 128]
        lane = lax.broadcasted_iota(jnp.int32, v.shape, 1)
        v = jnp.where(lane < rem_lanes, v, jnp.zeros_like(v))
        part = part + v.astype(jnp.float32)
    acc_ref[...] += part


def _gap_split_kernel(x_ref, o_ref, acc_ref, *, hw, hw_tile, inv_hw):
    """Row-blocks x HW-chunks grid with a lane-dense f32 accumulator."""
    k = pl.program_id(1)
    num_k = pl.cdiv(hw, hw_tile)           # static
    rem = hw - (num_k - 1) * hw_tile       # static: valid cols in last chunk

    @pl.when(k == 0)
    def _():
        acc_ref[...] = jnp.zeros_like(acc_ref)

    if rem == hw_tile:
        # H*W divides evenly into chunks: no masking anywhere.
        _accum_lane_chunks(x_ref, acc_ref, hw_tile)
    else:
        @pl.when(k < num_k - 1)
        def _():
            _accum_lane_chunks(x_ref, acc_ref, hw_tile)

        @pl.when(k == num_k - 1)
        def _():
            _accum_lane_chunks(x_ref, acc_ref, rem)

    @pl.when(k == num_k - 1)
    def _():
        o_ref[...] = (jnp.sum(acc_ref[...], axis=-1, keepdims=True)
                      * inv_hw).astype(o_ref.dtype)


# ----------------------------------------------------------------------------
# Tile chooser
# ----------------------------------------------------------------------------

def _choose_tiles(rows, hw, itemsize, sublane, target_bytes):
    """Pick (row_tile, hw_tile). hw_tile == hw selects the full-HW kernel."""
    full_groups = rows // sublane

    # Case A: a full-H*W block of one sublane group fits the byte budget.
    if hw * itemsize * sublane <= target_bytes:
        g = max(1, target_bytes // (hw * itemsize * sublane))
        g = min(g, max(1, full_groups))
        if full_groups >= 2:
            g = min(g, full_groups // 2)    # >=2 row blocks (v7x megacore)
        return sublane * g, hw

    # Case B: split H*W into multiple-of-128 lane chunks.
    g_pref = max(1, 64 // sublane)          # ~64 rows -> >=4 accumulate chains
    g_min = max(1, 32 // sublane)           # never below ~32 rows if avoidable
    g = min(g_pref, max(1, full_groups))
    if full_groups >= 2 * g_min:
        g = min(g, full_groups // 2)        # >=2 row blocks (v7x megacore)
    row_tile = sublane * g

    hw_tile = (target_bytes // (row_tile * itemsize)) // 128 * 128
    hw_tile = max(512, min(hw_tile, (hw // 128) * 128))
    if hw_tile >= hw:
        return row_tile, hw
    # Prefer a chunk length that divides H*W exactly (no masked tail chunk),
    # without dropping below half the budget-sized chunk (keep long DMA runs).
    lo = max(512, hw_tile // 2)
    c = hw_tile
    while c >= lo:
        if hw % c == 0:
            hw_tile = c
            break
        c -= 128
    return row_tile, hw_tile


# ----------------------------------------------------------------------------
# Wrapper
# ----------------------------------------------------------------------------

def global_avg_pool2d(x, squeeze=True, target_bytes=4 << 20):
    """Equivalent of F.avg_pool2d(x, (H, W)) [+ .view(B, C) if squeeze]."""
    B, C, H, W = x.shape
    hw = H * W
    rows = B * C
    xf = x.reshape(rows, hw)

    itemsize = jnp.dtype(x.dtype).itemsize
    sublane = {4: 8, 2: 16, 1: 32}.get(itemsize, 8)
    row_tile, hw_tile = _choose_tiles(rows, hw, itemsize, sublane, target_bytes)

    main = (rows // row_tile) * row_tile
    inv_hw = 1.0 / float(hw)
    parts = []

    if main > 0:
        num_row_blocks = main // row_tile
        if hw_tile == hw:
            out_main = pl.pallas_call(
                functools.partial(_gap_full_kernel, inv_hw=inv_hw),
                out_shape=jax.ShapeDtypeStruct((main, 1), x.dtype),
                grid_spec=pltpu.PrefetchScalarGridSpec(
                    num_scalar_prefetch=0,
                    grid=(num_row_blocks,),
                    in_specs=[pl.BlockSpec((row_tile, hw), lambda i: (i, 0))],
                    out_specs=pl.BlockSpec((row_tile, 1), lambda i: (i, 0)),
                ),
                compiler_params=pltpu.CompilerParams(
                    dimension_semantics=("parallel",),
                    vmem_limit_bytes=32 << 20,
                ),
            )(xf[:main])
        else:
            num_k = pl.cdiv(hw, hw_tile)
            out_main = pl.pallas_call(
                functools.partial(_gap_split_kernel, hw=hw, hw_tile=hw_tile,
                                  inv_hw=inv_hw),
                out_shape=jax.ShapeDtypeStruct((main, 1), x.dtype),
                grid_spec=pltpu.PrefetchScalarGridSpec(
                    num_scalar_prefetch=0,
                    grid=(num_row_blocks, num_k),
                    in_specs=[pl.BlockSpec((row_tile, hw_tile),
                                           lambda i, k: (i, k))],
                    out_specs=pl.BlockSpec((row_tile, 1),
                                           lambda i, k: (i, 0)),
                    scratch_shapes=[pltpu.VMEM((row_tile, 128), jnp.float32)],
                ),
                compiler_params=pltpu.CompilerParams(
                    dimension_semantics=("parallel", "arbitrary"),
                    vmem_limit_bytes=32 << 20,
                ),
            )(xf[:main])
        parts.append(out_main)

    tail = rows - main
    if tail > 0:
        # Tiny leftover (< row_tile rows): plain JAX instead of padding the
        # whole input through HBM.
        tail_out = jnp.mean(xf[main:].astype(jnp.float32), axis=-1,
                            keepdims=True).astype(x.dtype)
        parts.append(tail_out)

    out = parts[0] if len(parts) == 1 else jnp.concatenate(parts, axis=0)

    if squeeze:
        return out.reshape(B, C)
    return out.reshape(B, C, 1, 1)


if __name__ == "__main__":
    key = jax.random.PRNGKey(0)

    # Primary case at small shapes (full-HW single-step kernel path).
    B, C, H, W = 2, 4, 16, 16
    x = jax.random.normal(key, (B, C, H, W), dtype=jnp.float32)
    y = jax.block_until_ready(global_avg_pool2d(x, squeeze=True))
    y_ref = jnp.mean(x, axis=(2, 3))
    assert y.shape == (B, C), y.shape
    assert jnp.allclose(y, y_ref, atol=1e-5, rtol=1e-5)

    # squeeze=False path (shape (B, C, 1, 1)).
    y4 = jax.block_until_ready(global_avg_pool2d(x, squeeze=False))
    assert y4.shape == (B, C, 1, 1)
    assert jnp.allclose(y4.reshape(B, C), y_ref, atol=1e-5, rtol=1e-5)

    # Non-multiple row count (B*C=15): main kernel + jnp row-tail path.
    B2, C2 = 3, 5
    x2 = jax.random.normal(jax.random.PRNGKey(1), (B2, C2, H, W), jnp.float32)
    y2 = jax.block_until_ready(global_avg_pool2d(x2, squeeze=True))
    assert y2.shape == (B2, C2)
    assert jnp.allclose(y2, jnp.mean(x2, axis=(2, 3)), atol=1e-5, rtol=1e-5)

    # Split-HW path with a masked final lane chunk (H*W=2025 is not a multiple
    # of 128).  A small target_bytes forces the split at small test shapes.
    B3, C3, H3, W3 = 4, 32, 45, 45
    x3 = jax.random.normal(jax.random.PRNGKey(2), (B3, C3, H3, W3),
                           jnp.float32)
    y3 = jax.block_until_ready(
        global_avg_pool2d(x3, squeeze=True, target_bytes=32 << 10))
    assert y3.shape == (B3, C3)
    assert jnp.allclose(y3, jnp.mean(x3, axis=(2, 3)), atol=1e-5, rtol=1e-5)

    print("KERNEL_OK")
</pallas_src>

<mosaic_0001>
module attributes {stable_mosaic.version = 11 : i64} {
  func.func @_gap_full_kernel(%arg0: i32, %arg1: memref<8x256xf32, #tpu.memory_space<vmem>>, %arg2: memref<8x1xf32, #tpu.memory_space<vmem>>) attributes {dimension_semantics = [#tpu.dimension_semantics<parallel>], iteration_bounds = array<i64: 1>, scalar_prefetch = 0 : i64, scratch_operands = 0 : i64, tpu.core_type = #tpu.core_type<tc>, window_params = [{transform_indices = @transform_0, window_bounds = array<i64: 8, 256>}, {transform_indices = @transform_1, window_bounds = array<i64: 8, 1>}]} {
    %c0 = arith.constant 0 : index
    %c0_0 = arith.constant 0 : index
    %0 = vector.load %arg1[%c0, %c0_0] : memref<8x256xf32, #tpu.memory_space<vmem>>, vector<8x256xf32>
    %cst = arith.constant dense<0.000000e+00> : vector<8xf32>
    %1 = vector.multi_reduction <add>, %0, %cst [1] : vector<8x256xf32> to vector<8xf32>
    %2 = vector.shape_cast %1 : vector<8xf32> to vector<8x1xf32>
    %cst_1 = arith.constant 3.906250e-03 : f32
    %3 = vector.broadcast %cst_1 : f32 to vector<8x1xf32>
    %4 = arith.mulf %2, %3 : vector<8x1xf32>
    %c0_2 = arith.constant 0 : index
    %c0_3 = arith.constant 0 : index
    %5 = vector.load %arg2[%c0_2, %c0_3] : memref<8x1xf32, #tpu.memory_space<vmem>>, vector<8x1xf32>
    tpu.vector_store %arg2[%c0_2, %c0_3], %4 {strides = array<i32>} : memref<8x1xf32, #tpu.memory_space<vmem>>, vector<8x1xf32>,
    return
  }
  func.func @transform_0(%arg0: i32) -> (i32, i32) {
    %c0_i32 = arith.constant 0 : i32
    %c0_i32_0 = arith.constant 0 : i32
    return %arg0, %c0_i32 : i32, i32
  }
  func.func @transform_1(%arg0: i32) -> (i32, i32) {
    %c0_i32 = arith.constant 0 : i32
    %c0_i32_0 = arith.constant 0 : i32
    return %arg0, %c0_i32 : i32, i32
  }
}

</mosaic_0001>

<bundles_post_ra>
// kernel: tpu_custom_call.1
= control target key start
LH: loop header
LB: loop body
LE: loop exit
PB: predicated region body
PF: predicated region fallthrough
CT: control target
= control target key end

     0   :  { %6 = vsyncpa [#allocation3], 0  ;;  %s56_s6 = smov [#allocation2]   ;;  %s73_s0 = inlined_call_operand.hbm [shape: f32[8,256], index: 0, kind: input, shape index: {}]   ;;  %s74_s1 = inlined_call_operand.vmem [shape: f32[8,1], index: 1, kind: output, shape index: {}]  }
   0x1   :  { %s13_s7 = sshll.u32 %s56_s6, 4  ;;  %s14_s7 = int_to_ptr.vmem [resolvable:$true] %s13_s7 }
   0x2   :  { %s42_s8 = scalar_lea.vmem %s14_s7, 256  ;;  %p47_p1 = scmp.lt.s32.totalorder %s14_s7, %s14_s7 }
   0x3   :  { %p43_p0 = scmp.ne.s32.totalorder %s14_s7, %s42_s8  ;;  %p48_p2 = scmp.lt.s32.totalorder %s42_s8, %s42_s8 }
   0x5   :  { %p49_p3 = por %p48_p2, %p47_p1 }
   0x7   :  { %p50_p4 = pnand %p49_p3, %p43_p0 }
   0x9   :  { %53 = shalt.err (!%p50_p4)
}
   0xa   :  { %16 = dma.hbm_to_vmem [thread:$0]  %s73_s0, 256, %s14_s7, [#allocation3]  }
   0xb   :  { %54 = dma.done.wait [#allocation3], 256  }
   0xc   :  { %55 = vsyncadd [#allocation3], 4294967040  ;;  %v20_v0 = vld [vmem:[#allocation2] sm:$0xff]  ;;  %v21_v1 = vld [vmem:[#allocation2 + $0x8] sm:$0xff]  ;;  %vm26_vm0 = vcmask 7168  }
   0xd   :  { %v22_v2 = vadd.f32 %v21_v1, %v20_v0 }
   0xf   :  { %23 = vadd.xlane.f32.xlu0 %v22_v2 }
  0x98   :  { %v24_v3 = vpop.xlane.xlu0 %23 }
  0x99   :  { %v25_v4 = vmul.f32 0.00390625, %v24_v3 }
  0x9b   :  { %27 = vst.msk [vmem:[%s74_s1] sm:$0xff] %vm26_vm0, %v25_v4 }
  0x9c   :  { %32 = vsyncpa [#allocation3], 1 }

</bundles_post_ra>
